<compile_context>
chip_gen: v6e
topology: v6e:2x2x1
jax: 0.10.0
libtpu: 0.0.40
codegen_flags: <defaults>
</compile_context>

<pallas_src>
import numpy as np
import jax
import jax.numpy as jnp
from jax import lax
from jax.experimental import pallas as pl
from jax.experimental.pallas import tpu as pltpu

EPS = 1e-5  # nn.InstanceNorm2d default

# (parity plane p, shifted view q, ky, kx)
#   planes p (= 2*row_parity + col_parity): 0=ee, 1=eo, 2=oe, 3=oo
#   views  q: 0 = x[m, n], 1 = x[m, n+1], 2 = x[m+1, n], 3 = x[m+1, n+1]
_PLACEMENTS = (
    (0, 0, 1, 1),                                              # out[2m  , 2n  ]
    (1, 1, 1, 0), (1, 0, 1, 2),                                # out[2m  , 2n+1]
    (2, 2, 0, 1), (2, 0, 2, 1),                                # out[2m+1, 2n  ]
    (3, 3, 0, 0), (3, 2, 0, 2), (3, 1, 2, 0), (3, 0, 2, 2),    # out[2m+1, 2n+1]
)


def _make_kernel(n_batch, cin, cout, h, w):
    hw = h * w

    def kernel(x_ref, w_ref, o_ref):
        # x_ref : (N, Cin, HW)      compute dtype (bf16 default), flat spatial on lanes
        # w_ref : (4*Cout, 4*Cin)   block conv-transpose weight, compute dtype
        # o_ref : (N, 4*Cout, HW)   f32, parity-major channel axis [ee; eo; oe; oo]
        wb = w_ref[...]  # load once; stays resident across the whole batch

        # Border masks for the shifted views (built once, reused per sample).
        lane = lax.broadcasted_iota(jnp.int32, (1, hw), 1)
        not_last_col = (lane % w) != (w - 1)
        not_last_row = lane < (h - 1) * w
        not_last_both = jnp.logical_and(not_last_col, not_last_row)

        def body(n, carry):
            x00 = x_ref[n]                                   # (Cin, HW)
            zero = jnp.zeros_like(x00)
            # x[m, n+1], x[m+1, n], x[m+1, n+1]: lane rotation (XLU) + border mask.
            x01 = jnp.where(not_last_col, pltpu.roll(x00, hw - 1, 1), zero)
            x10 = jnp.where(not_last_row, pltpu.roll(x00, hw - w, 1), zero)
            x11 = jnp.where(not_last_both, pltpu.roll(x00, hw - w - 1, 1), zero)
            xs = jnp.concatenate([x00, x01, x10, x11], axis=0)   # (4*Cin, HW)

            # One fused GEMM -> all four parity planes, f32 accumulation on MXU.
            y = jnp.dot(wb, xs, preferred_element_type=jnp.float32)  # (4*Cout, HW)
            y3 = y.reshape(4, cout, hw)     # plane-major view (aligned leading split)

            # InstanceNorm2d stats per channel over all 4*HW spatial positions.
            s1 = jnp.sum(jnp.sum(y3, axis=2, keepdims=True), axis=0, keepdims=True)
            s2 = jnp.sum(jnp.sum(y3 * y3, axis=2, keepdims=True), axis=0, keepdims=True)
            n_elem = 4.0 * hw
            mean = s1 / n_elem                                   # (1, Cout, 1)
            var = jnp.maximum(s2 / n_elem - mean * mean, 0.0)    # biased variance, clamped
            inv = lax.rsqrt(var + EPS)
            # One Newton-Raphson step: O(Cout) work, makes the result independent of
            # the raw HW rsqrt approximation quality across TPU generations.
            inv = inv * (1.5 - 0.5 * (var + EPS) * inv * inv)

            z = (y3 - mean) * inv
            z = z * jax.nn.sigmoid(z)                            # SiLU
            o_ref[n] = z.reshape(4 * cout, hw).astype(o_ref.dtype)
            return carry

        lax.fori_loop(0, n_batch, body, None, unroll=True)

    return kernel


def decoder_forward(x_nchw, w, b, *, compute_dtype=jnp.bfloat16):
    """x_nchw: (N, Cin, H, W); w: (3, 3, Cin, Cout) (== PyTorch weight[c, o, ky, kx]
    stored as w[ky, kx, c, o]); b: (Cout,) conv bias (a mathematical no-op before
    InstanceNorm2d(affine=False) -> dropped).  Returns (N, Cout, 2H, 2W) float32."""
    del b  # exactly cancelled by InstanceNorm's mean subtraction (affine=False)
    N, Cin, H, W = x_nchw.shape
    Cout = w.shape[-1]
    HW = H * W
    # NOTE: HW multiple of 128 keeps loads/stores lane-dense; Cout multiple of 8
    # keeps the plane-major channel splits on (8,128) tile boundaries.

    # Single (N, Cin, HW) input -- no 4x shifted-view materialization.
    xs = x_nchw.reshape(N, Cin, HW).astype(compute_dtype)

    # Block weight (4*Cout, 4*Cin) with conv-transpose taps placed per parity table.
    wf = w.astype(jnp.float32)
    wb = jnp.zeros((4 * Cout, 4 * Cin), jnp.float32)
    for p, q, ky, kx in _PLACEMENTS:
        wb = wb.at[p * Cout:(p + 1) * Cout, q * Cin:(q + 1) * Cin].set(wf[ky, kx].T)
    wb = wb.astype(compute_dtype)

    out = pl.pallas_call(
        _make_kernel(N, Cin, Cout, H, W),
        out_shape=jax.ShapeDtypeStruct((N, 4 * Cout, HW), jnp.float32),
        grid=(1,),  # single invocation: batch handled in-kernel (fixed overhead paid once)
        in_specs=[
            pl.BlockSpec((N, Cin, HW), lambda i: (0, 0, 0)),
            pl.BlockSpec((4 * Cout, 4 * Cin), lambda i: (0, 0)),
        ],
        out_specs=pl.BlockSpec((N, 4 * Cout, HW), lambda i: (0, 0, 0)),
        compiler_params=pltpu.CompilerParams(dimension_semantics=("arbitrary",)),
    )(xs, wb)

    # Interleave parity planes into NCHW (N, Cout, 2H, 2W).
    # TODO(synk): fold this into the kernel store path (bf16 pair -> u32 pack) so it
    # becomes a pure reshape instead of an XLA transpose pass over the output.
    y = out.reshape(N, 2, 2, Cout, H, W)           # (n, py, px, c, m, n')
    y = jnp.transpose(y, (0, 3, 4, 1, 5, 2))       # (n, c, m, py, n', px)
    return y.reshape(N, Cout, 2 * H, 2 * W)


def reference(x_nchw, w, b):
    """Pure-JAX f32 reference: ConvTranspose2d + InstanceNorm2d + SiLU (NCHW)."""
    Cout = w.shape[-1]
    # transposed conv == dilated conv with spatially-flipped, channel-swapped kernel
    rhs = jnp.transpose(w[::-1, ::-1], (3, 2, 0, 1))       # (Cout, Cin, 3, 3)
    y = lax.conv_general_dilated(
        x_nchw.astype(jnp.float32), rhs.astype(jnp.float32),
        window_strides=(1, 1),
        padding=((1, 2), (1, 2)),                          # (k-1-p, k-1-p+output_padding)
        lhs_dilation=(2, 2),
        dimension_numbers=("NCHW", "OIHW", "NCHW"),
        precision=lax.Precision.HIGHEST,                   # keep the reference in true f32
    )
    y = y + b.reshape(1, Cout, 1, 1)
    mean = y.mean(axis=(2, 3), keepdims=True)
    var = y.var(axis=(2, 3), keepdims=True)                # biased, matches InstanceNorm2d
    z = (y - mean) / jnp.sqrt(var + EPS)
    return z * jax.nn.sigmoid(z)


if __name__ == "__main__":
    key = jax.random.PRNGKey(0)
    k1, k2, k3 = jax.random.split(key, 3)
    N, Cin, Cout, H, W = 2, 4, 8, 16, 16

    x = jax.random.normal(k1, (N, Cin, H, W), jnp.float32)
    # PyTorch ConvTranspose2d weight (Cin, Cout, 3, 3), stored here as (3, 3, Cin, Cout).
    w = jax.random.normal(k2, (3, 3, Cin, Cout), jnp.float32) * 0.1
    b = jax.random.normal(k3, (Cout,), jnp.float32) * 0.1

    ref = jax.block_until_ready(reference(x, w, b))

    # 1) f32 compute path vs the f32 reference.  Tolerance kept generation-agnostic
    #    (covers TPUs where f32 MXU matmuls are emulated with reduced-precision passes).
    out_f32 = jax.block_until_ready(decoder_forward(x, w, b, compute_dtype=jnp.float32))
    assert out_f32.shape == (N, Cout, 2 * H, 2 * W)
    np.testing.assert_allclose(np.asarray(out_f32), np.asarray(ref), rtol=2e-2, atol=2e-2)

    # 2) Default perf config: bf16 MXU operands with f32 accumulation.  Tight check
    #    against the same f32 reference evaluated on bf16-rounded inputs (isolates the
    #    kernel math from the deliberate operand quantization).
    out_bf16 = jax.block_until_ready(decoder_forward(x, w, b))
    assert out_bf16.shape == (N, Cout, 2 * H, 2 * W)
    xq = x.astype(jnp.bfloat16).astype(jnp.float32)
    wq = w.astype(jnp.bfloat16).astype(jnp.float32)
    ref_q = jax.block_until_ready(reference(xq, wq, b))
    np.testing.assert_allclose(np.asarray(out_bf16), np.asarray(ref_q), rtol=2e-3, atol=2e-3)

    print("KERNEL_OK")
</pallas_src>

<mosaic_0001>
module attributes {stable_mosaic.version = 11 : i64} {
  func.func @kernel(%arg0: i32, %arg1: memref<2x4x256xf32, #tpu.memory_space<vmem>>, %arg2: memref<32x16xf32, #tpu.memory_space<vmem>>, %arg3: memref<2x32x256xf32, #tpu.memory_space<vmem>>) attributes {dimension_semantics = [#tpu.dimension_semantics<arbitrary>], iteration_bounds = array<i64: 1>, scalar_prefetch = 0 : i64, scratch_operands = 0 : i64, tpu.core_type = #tpu.core_type<tc>, window_params = [{pipeline_mode = #tpu.pipeline_mode<synchronous>, transform_indices = @transform_0, window_bounds = array<i64: 2, 4, 256>}, {pipeline_mode = #tpu.pipeline_mode<synchronous>, transform_indices = @transform_1, window_bounds = array<i64: 32, 16>}, {pipeline_mode = #tpu.pipeline_mode<synchronous>, transform_indices = @transform_2, window_bounds = array<i64: 2, 32, 256>}]} {
    %c0 = arith.constant 0 : index
    %c0_0 = arith.constant 0 : index
    %0 = vector.load %arg2[%c0, %c0_0] : memref<32x16xf32, #tpu.memory_space<vmem>>, vector<32x16xf32>
    %1 = tpu.iota {dimensions = array<i32: 1>} : vector<1x256xi32>
    %c16_i32 = arith.constant 16 : i32
    %c0_i32 = arith.constant 0 : i32
    %2 = arith.cmpi eq, %c16_i32, %c0_i32 : i32
    %c1_i32 = arith.constant 1 : i32
    %3 = arith.select %2, %c1_i32, %c16_i32 : i32
    %4 = vector.broadcast %3 : i32 to vector<1x256xi32>
    %5 = arith.remsi %1, %4 : vector<1x256xi32>
    %c0_i32_1 = arith.constant 0 : i32
    %6 = vector.broadcast %c0_i32_1 : i32 to vector<1x256xi32>
    %7 = arith.cmpi ne, %5, %6 : vector<1x256xi32>
    %c0_i32_2 = arith.constant 0 : i32
    %8 = vector.broadcast %c0_i32_2 : i32 to vector<1x256xi32>
    %9 = arith.cmpi slt, %5, %8 : vector<1x256xi32>
    %c0_i32_3 = arith.constant 0 : i32
    %10 = arith.cmpi slt, %3, %c0_i32_3 : i32
    %11 = vector.broadcast %10 : i1 to vector<1x256xi1>
    %12 = vector.broadcast %11 : vector<1x256xi1> to vector<1x256xi1>
    %13 = arith.xori %9, %12 : vector<1x256xi1>
    %14 = arith.andi %13, %7 : vector<1x256xi1>
    %15 = vector.broadcast %3 : i32 to vector<1x256xi32>
    %16 = arith.addi %5, %15 : vector<1x256xi32>
    %17 = arith.select %14, %16, %5 : vector<1x256xi1>, vector<1x256xi32>
    %c15_i32 = arith.constant 15 : i32
    %18 = vector.broadcast %c15_i32 : i32 to vector<1x256xi32>
    %19 = arith.cmpi ne, %17, %18 : vector<1x256xi32>
    %c240_i32 = arith.constant 240 : i32
    %20 = vector.broadcast %c240_i32 : i32 to vector<1x256xi32>
    %21 = arith.cmpi slt, %1, %20 : vector<1x256xi32>
    %22 = arith.andi %19, %21 : vector<1x256xi1>
    %c0_i32_4 = arith.constant 0 : i32
    %23 = arith.index_cast %c0_i32_4 : i32 to index
    %c0_5 = arith.constant 0 : index
    %c0_6 = arith.constant 0 : index
    %24 = vector.load %arg1[%23, %c0_5, %c0_6] : memref<2x4x256xf32, #tpu.memory_space<vmem>>, vector<1x4x256xf32>
    %25 = vector.shape_cast %24 : vector<1x4x256xf32> to vector<4x256xf32>
    %cst = arith.constant 0.000000e+00 : f32
    %26 = vector.broadcast %cst : f32 to vector<4x256xf32>
    %c255_i32 = arith.constant 255 : i32
    %27 = tpu.dynamic_rotate %25 by %c255_i32 dim 1 : vector<4x256xf32>, i32 -> vector<4x256xf32>
    %28 = vector.shape_cast %19 : vector<1x256xi1> to vector<1x256xi1>
    %29 = vector.broadcast %28 : vector<1x256xi1> to vector<4x256xi1>
    %30 = arith.select %29, %27, %26 : vector<4x256xi1>, vector<4x256xf32>
    %c240_i32_7 = arith.constant 240 : i32
    %31 = tpu.dynamic_rotate %25 by %c240_i32_7 dim 1 : vector<4x256xf32>, i32 -> vector<4x256xf32>
    %32 = vector.shape_cast %21 : vector<1x256xi1> to vector<1x256xi1>
    %33 = vector.broadcast %32 : vector<1x256xi1> to vector<4x256xi1>
    %34 = arith.select %33, %31, %26 : vector<4x256xi1>, vector<4x256xf32>
    %c239_i32 = arith.constant 239 : i32
    %35 = tpu.dynamic_rotate %25 by %c239_i32 dim 1 : vector<4x256xf32>, i32 -> vector<4x256xf32>
    %36 = vector.shape_cast %22 : vector<1x256xi1> to vector<1x256xi1>
    %37 = vector.broadcast %36 : vector<1x256xi1> to vector<4x256xi1>
    %38 = arith.select %37, %35, %26 : vector<4x256xi1>, vector<4x256xf32>
    %39 = tpu.concatenate %25, %30, %34, %38 in 0 : vector<4x256xf32>, vector<4x256xf32>, vector<4x256xf32>, vector<4x256xf32> -> vector<16x256xf32>
    %cst_8 = arith.constant dense<0.000000e+00> : vector<32x256xf32>
    %40 = tpu.matmul %0, %39, %cst_8 {dimension_numbers = #tpu.dot_dimension_numbers<[1], [0], [0], [1], [0, 0, 1, 1], [], []>} : vector<32x16xf32>, vector<16x256xf32>, vector<32x256xf32> -> vector<32x256xf32>
    %41 = vector.shape_cast %40 : vector<32x256xf32> to vector<4x8x256xf32>
    %cst_9 = arith.constant dense<0.000000e+00> : vector<4x8xf32>
    %42 = vector.multi_reduction <add>, %41, %cst_9 [2] : vector<4x8x256xf32> to vector<4x8xf32>
    %43 = vector.shape_cast %42 : vector<4x8xf32> to vector<4x8x1xf32>
    %cst_10 = arith.constant dense<0.000000e+00> : vector<8x1xf32>
    %44 = vector.multi_reduction <add>, %43, %cst_10 [0] : vector<4x8x1xf32> to vector<8x1xf32>
    %45 = vector.shape_cast %44 : vector<8x1xf32> to vector<1x8x1xf32>
    %46 = arith.mulf %41, %41 : vector<4x8x256xf32>
    %cst_11 = arith.constant dense<0.000000e+00> : vector<4x8xf32>
    %47 = vector.multi_reduction <add>, %46, %cst_11 [2] : vector<4x8x256xf32> to vector<4x8xf32>
    %48 = vector.shape_cast %47 : vector<4x8xf32> to vector<4x8x1xf32>
    %cst_12 = arith.constant dense<0.000000e+00> : vector<8x1xf32>
    %49 = vector.multi_reduction <add>, %48, %cst_12 [0] : vector<4x8x1xf32> to vector<8x1xf32>
    %50 = vector.shape_cast %49 : vector<8x1xf32> to vector<1x8x1xf32>
    %cst_13 = arith.constant 1.024000e+03 : f32
    %51 = vector.broadcast %cst_13 : f32 to vector<1x8x1xf32>
    %52 = arith.divf %45, %51 : vector<1x8x1xf32>
    %cst_14 = arith.constant 1.024000e+03 : f32
    %53 = vector.broadcast %cst_14 : f32 to vector<1x8x1xf32>
    %54 = arith.divf %50, %53 : vector<1x8x1xf32>
    %55 = arith.mulf %52, %52 : vector<1x8x1xf32>
    %56 = arith.subf %54, %55 : vector<1x8x1xf32>
    %cst_15 = arith.constant 0.000000e+00 : f32
    %57 = vector.broadcast %cst_15 : f32 to vector<1x8x1xf32>
    %58 = arith.maximumf %56, %57 : vector<1x8x1xf32>
    %cst_16 = arith.constant 9.99999974E-6 : f32
    %59 = vector.broadcast %cst_16 : f32 to vector<1x8x1xf32>
    %60 = arith.addf %58, %59 : vector<1x8x1xf32>
    %61 = math.rsqrt %60 : vector<1x8x1xf32>
    %cst_17 = arith.constant 9.99999974E-6 : f32
    %62 = vector.broadcast %cst_17 : f32 to vector<1x8x1xf32>
    %63 = arith.addf %58, %62 : vector<1x8x1xf32>
    %cst_18 = arith.constant 5.000000e-01 : f32
    %64 = vector.broadcast %cst_18 : f32 to vector<1x8x1xf32>
    %65 = arith.mulf %64, %63 : vector<1x8x1xf32>
    %66 = arith.mulf %65, %61 : vector<1x8x1xf32>
    %67 = arith.mulf %66, %61 : vector<1x8x1xf32>
    %cst_19 = arith.constant 1.500000e+00 : f32
    %68 = vector.broadcast %cst_19 : f32 to vector<1x8x1xf32>
    %69 = arith.subf %68, %67 : vector<1x8x1xf32>
    %70 = arith.mulf %61, %69 : vector<1x8x1xf32>
    %71 = vector.broadcast %52 : vector<1x8x1xf32> to vector<4x8x256xf32>
    %72 = arith.subf %41, %71 : vector<4x8x256xf32>
    %73 = vector.broadcast %70 : vector<1x8x1xf32> to vector<4x8x256xf32>
    %74 = arith.mulf %72, %73 : vector<4x8x256xf32>
    %75 = arith.negf %74 : vector<4x8x256xf32>
    %76 = math.exp %75 : vector<4x8x256xf32>
    %cst_20 = arith.constant 1.000000e+00 : f32
    %77 = vector.broadcast %cst_20 : f32 to vector<4x8x256xf32>
    %78 = arith.addf %77, %76 : vector<4x8x256xf32>
    %79 = arith.divf %77, %78 : vector<4x8x256xf32>
    %80 = arith.mulf %74, %79 : vector<4x8x256xf32>
    %81 = vector.shape_cast %80 : vector<4x8x256xf32> to vector<32x256xf32>
    %82 = arith.index_cast %c0_i32_4 : i32 to index
    %c0_21 = arith.constant 0 : index
    %c0_22 = arith.constant 0 : index
    %83 = vector.load %arg3[%82, %c0_21, %c0_22] : memref<2x32x256xf32, #tpu.memory_space<vmem>>, vector<1x32x256xf32>
    %84 = vector.shape_cast %83 : vector<1x32x256xf32> to vector<32x256xf32>
    %85 = vector.shape_cast %81 : vector<32x256xf32> to vector<1x32x256xf32>
    tpu.vector_store %arg3[%82, %c0_21, %c0_22], %85 {strides = array<i32>} : memref<2x32x256xf32, #tpu.memory_space<vmem>>, vector<1x32x256xf32>,
    %c1_i32_23 = arith.constant 1 : i32
    %86 = arith.index_cast %c1_i32_23 : i32 to index
    %c0_24 = arith.constant 0 : index
    %c0_25 = arith.constant 0 : index
    %87 = vector.load %arg1[%86, %c0_24, %c0_25] : memref<2x4x256xf32, #tpu.memory_space<vmem>>, vector<1x4x256xf32>
    %88 = vector.shape_cast %87 : vector<1x4x256xf32> to vector<4x256xf32>
    %cst_26 = arith.constant 0.000000e+00 : f32
    %89 = vector.broadcast %cst_26 : f32 to vector<4x256xf32>
    %c255_i32_27 = arith.constant 255 : i32
    %90 = tpu.dynamic_rotate %88 by %c255_i32_27 dim 1 : vector<4x256xf32>, i32 -> vector<4x256xf32>
    %91 = vector.shape_cast %19 : vector<1x256xi1> to vector<1x256xi1>
    %92 = vector.broadcast %91 : vector<1x256xi1> to vector<4x256xi1>
    %93 = arith.select %92, %90, %89 : vector<4x256xi1>, vector<4x256xf32>
    %c240_i32_28 = arith.constant 240 : i32
    %94 = tpu.dynamic_rotate %88 by %c240_i32_28 dim 1 : vector<4x256xf32>, i32 -> vector<4x256xf32>
    %95 = vector.shape_cast %21 : vector<1x256xi1> to vector<1x256xi1>
    %96 = vector.broadcast %95 : vector<1x256xi1> to vector<4x256xi1>
    %97 = arith.select %96, %94, %89 : vector<4x256xi1>, vector<4x256xf32>
    %c239_i32_29 = arith.constant 239 : i32
    %98 = tpu.dynamic_rotate %88 by %c239_i32_29 dim 1 : vector<4x256xf32>, i32 -> vector<4x256xf32>
    %99 = vector.shape_cast %22 : vector<1x256xi1> to vector<1x256xi1>
    %100 = vector.broadcast %99 : vector<1x256xi1> to vector<4x256xi1>
    %101 = arith.select %100, %98, %89 : vector<4x256xi1>, vector<4x256xf32>
    %102 = tpu.concatenate %88, %93, %97, %101 in 0 : vector<4x256xf32>, vector<4x256xf32>, vector<4x256xf32>, vector<4x256xf32> -> vector<16x256xf32>
    %cst_30 = arith.constant dense<0.000000e+00> : vector<32x256xf32>
    %103 = tpu.matmul %0, %102, %cst_30 {dimension_numbers = #tpu.dot_dimension_numbers<[1], [0], [0], [1], [0, 0, 1, 1], [], []>} : vector<32x16xf32>, vector<16x256xf32>, vector<32x256xf32> -> vector<32x256xf32>
    %104 = vector.shape_cast %103 : vector<32x256xf32> to vector<4x8x256xf32>
    %cst_31 = arith.constant dense<0.000000e+00> : vector<4x8xf32>
    %105 = vector.multi_reduction <add>, %104, %cst_31 [2] : vector<4x8x256xf32> to vector<4x8xf32>
    %106 = vector.shape_cast %105 : vector<4x8xf32> to vector<4x8x1xf32>
    %cst_32 = arith.constant dense<0.000000e+00> : vector<8x1xf32>
    %107 = vector.multi_reduction <add>, %106, %cst_32 [0] : vector<4x8x1xf32> to vector<8x1xf32>
    %108 = vector.shape_cast %107 : vector<8x1xf32> to vector<1x8x1xf32>
    %109 = arith.mulf %104, %104 : vector<4x8x256xf32>
    %cst_33 = arith.constant dense<0.000000e+00> : vector<4x8xf32>
    %110 = vector.multi_reduction <add>, %109, %cst_33 [2] : vector<4x8x256xf32> to vector<4x8xf32>
    %111 = vector.shape_cast %110 : vector<4x8xf32> to vector<4x8x1xf32>
    %cst_34 = arith.constant dense<0.000000e+00> : vector<8x1xf32>
    %112 = vector.multi_reduction <add>, %111, %cst_34 [0] : vector<4x8x1xf32> to vector<8x1xf32>
    %113 = vector.shape_cast %112 : vector<8x1xf32> to vector<1x8x1xf32>
    %cst_35 = arith.constant 1.024000e+03 : f32
    %114 = vector.broadcast %cst_35 : f32 to vector<1x8x1xf32>
    %115 = arith.divf %108, %114 : vector<1x8x1xf32>
    %cst_36 = arith.constant 1.024000e+03 : f32
    %116 = vector.broadcast %cst_36 : f32 to vector<1x8x1xf32>
    %117 = arith.divf %113, %116 : vector<1x8x1xf32>
    %118 = arith.mulf %115, %115 : vector<1x8x1xf32>
    %119 = arith.subf %117, %118 : vector<1x8x1xf32>
    %cst_37 = arith.constant 0.000000e+00 : f32
    %120 = vector.broadcast %cst_37 : f32 to vector<1x8x1xf32>
    %121 = arith.maximumf %119, %120 : vector<1x8x1xf32>
    %cst_38 = arith.constant 9.99999974E-6 : f32
    %122 = vector.broadcast %cst_38 : f32 to vector<1x8x1xf32>
    %123 = arith.addf %121, %122 : vector<1x8x1xf32>
    %124 = math.rsqrt %123 : vector<1x8x1xf32>
    %cst_39 = arith.constant 9.99999974E-6 : f32
    %125 = vector.broadcast %cst_39 : f32 to vector<1x8x1xf32>
    %126 = arith.addf %121, %125 : vector<1x8x1xf32>
    %cst_40 = arith.constant 5.000000e-01 : f32
    %127 = vector.broadcast %cst_40 : f32 to vector<1x8x1xf32>
    %128 = arith.mulf %127, %126 : vector<1x8x1xf32>
    %129 = arith.mulf %128, %124 : vector<1x8x1xf32>
    %130 = arith.mulf %129, %124 : vector<1x8x1xf32>
    %cst_41 = arith.constant 1.500000e+00 : f32
    %131 = vector.broadcast %cst_41 : f32 to vector<1x8x1xf32>
    %132 = arith.subf %131, %130 : vector<1x8x1xf32>
    %133 = arith.mulf %124, %132 : vector<1x8x1xf32>
    %134 = vector.broadcast %115 : vector<1x8x1xf32> to vector<4x8x256xf32>
    %135 = arith.subf %104, %134 : vector<4x8x256xf32>
    %136 = vector.broadcast %133 : vector<1x8x1xf32> to vector<4x8x256xf32>
    %137 = arith.mulf %135, %136 : vector<4x8x256xf32>
    %138 = arith.negf %137 : vector<4x8x256xf32>
    %139 = math.exp %138 : vector<4x8x256xf32>
    %cst_42 = arith.constant 1.000000e+00 : f32
    %140 = vector.broadcast %cst_42 : f32 to vector<4x8x256xf32>
    %141 = arith.addf %140, %139 : vector<4x8x256xf32>
    %142 = arith.divf %140, %141 : vector<4x8x256xf32>
    %143 = arith.mulf %137, %142 : vector<4x8x256xf32>
    %144 = vector.shape_cast %143 : vector<4x8x256xf32> to vector<32x256xf32>
    %145 = arith.index_cast %c1_i32_23 : i32 to index
    %c0_43 = arith.constant 0 : index
    %c0_44 = arith.constant 0 : index
    %146 = vector.load %arg3[%145, %c0_43, %c0_44] : memref<2x32x256xf32, #tpu.memory_space<vmem>>, vector<1x32x256xf32>
    %147 = vector.shape_cast %146 : vector<1x32x256xf32> to vector<32x256xf32>
    %148 = vector.shape_cast %144 : vector<32x256xf32> to vector<1x32x256xf32>
    tpu.vector_store %arg3[%145, %c0_43, %c0_44], %148 {strides = array<i32>} : memref<2x32x256xf32, #tpu.memory_space<vmem>>, vector<1x32x256xf32>,
    %c2_i32 = arith.constant 2 : i32
    return
  }
  func.func @transform_0(%arg0: i32) -> (i32, i32, i32) {
    %c0_i32 = arith.constant 0 : i32
    %c0_i32_0 = arith.constant 0 : i32
    %c0_i32_1 = arith.constant 0 : i32
    %c0_i32_2 = arith.constant 0 : i32
    return %c0_i32, %c0_i32_0, %c0_i32_1 : i32, i32, i32
  }
  func.func @transform_1(%arg0: i32) -> (i32, i32) {
    %c0_i32 = arith.constant 0 : i32
    %c0_i32_0 = arith.constant 0 : i32
    %c0_i32_1 = arith.constant 0 : i32
    return %c0_i32, %c0_i32_0 : i32, i32
  }
  func.func @transform_2(%arg0: i32) -> (i32, i32, i32) {
    %c0_i32 = arith.constant 0 : i32
    %c0_i32_0 = arith.constant 0 : i32
    %c0_i32_1 = arith.constant 0 : i32
    %c0_i32_2 = arith.constant 0 : i32
    return %c0_i32, %c0_i32_0, %c0_i32_1 : i32, i32, i32
  }
}

</mosaic_0001>

<bundles_post_ra>
// kernel: tpu_custom_call.1
= control target key start
LH: loop header
LB: loop body
LE: loop exit
PB: predicated region body
PF: predicated region fallthrough
CT: control target
= control target key end

     0   :  { %s747_s13 = smov 111   ;;  %s1085_s0 = inlined_call_operand.vmem [shape: f32[2,4,256], index: 0, kind: input, shape index: {}]   ;;  %s1086_s1 = inlined_call_operand.vmem [shape: f32[32,16], index: 1, kind: input, shape index: {}]   ;;  %s1087_s2 = inlined_call_operand.hbm [shape: f32[2,32,256], index: 2, kind: output, shape index: {}]  }
   0x1   :  { %v772_v0 = vld [vmem:[%s1085_s0 + $0x8] sm:$0xff]  ;;  %v777_v1 = vld [vmem:[%s1085_s0] sm:$0xff] }
   0x2   :  { %363 = vrot.lane.b32.xlu1 %v772_v0, %s747_s13  ;;  %79 = vrot.lane.b32.xlu0 %v777_v1, %s747_s13  ;;  %v783_v2 = vcombine.high %v772_v0, %v772_v0  ;;  %v787_v3 = vcombine.high %v777_v1, %v777_v1 }
   0x3   :  { %7 = vsyncpa [#allocation3], 0  ;;  %v748_v4 = vmov 0.0   ;;  %s749_s0 = smov 127   ;;  %s750_s14 = smov 112   ;;  %v16_v5 = vlaneseq  ;;  %vm104_vm7 = vcmask 1043456  }
   0x4   :  { %186 = vmatprep.mubr.f32.mxu0 %v748_v4  ;;  %451 = vmatprep.mubr.f32.mxu1 %v748_v4  ;;  %v12_v45 = vld [vmem:[%s1086_s1] sm:$0xff]  ;;  %vm109_vm8 = vcmask 130048   ;;  %v13_v57 = vld [vmem:[%s1086_s1 + $0x8] sm:$0xff] }
   0x5   :  { %v801_v6 = vand.u32 127, %v16_v5 }
   0x6   :  { %365 = vrot.lane.b32.xlu1 %v783_v2, %s747_s13  ;;  %81 = vrot.lane.b32.xlu0 %v787_v3, %s747_s13 }
   0x7   :  { %v804_v7 = vadd.s32 128, %v801_v6  ;;  %v23_v12 = vand.u32 15, %v801_v6  ;;  %vm83_vm2 = vcmp.lt.s32.totalorder %v801_v6, 111  ;;  %vm57_vm3 = vcmp.lt.s32.totalorder %v801_v6, 127 }
   0x8   :  { %vm70_vm6 = vcmp.lt.s32.totalorder %v801_v6, 112 }
   0x9   :  { %v30_v10 = vand.u32 15, %v804_v7  ;;  %vm46_vm1 = vcmp.lt.s32.totalorder %v804_v7, 240  ;;  %vm825_vm5 = vcmp.ne.s32.totalorder %v23_v12, 15 }
   0xa   :  { %55 = vrot.lane.b32.xlu1 %v787_v3, %s749_s0  ;;  %53 = vrot.lane.b32.xlu0 %v777_v1, %s749_s0 }
   0xb   :  { %vm808_vm0 = vcmp.ne.s32.totalorder %v30_v10, 15 }
   0xc   :  { %vm819_vm4 = vmand %vm808_vm0, %vm46_vm1 }
   0xe   :  { %68 = vrot.lane.b32.xlu1 %v787_v3, %s750_s14  ;;  %66 = vrot.lane.b32.xlu0 %v777_v1, %s750_s14 }
  0x12   :  { %349 = vrot.lane.b32.xlu1 %v783_v2, %s749_s0  ;;  %347 = vrot.lane.b32.xlu0 %v772_v0, %s749_s0 }
  0x16   :  { %357 = vrot.lane.b32.xlu1 %v783_v2, %s750_s14  ;;  %355 = vrot.lane.b32.xlu0 %v772_v0, %s750_s14 }
  0x74   :  { %v364_v8 = vpop.permute.xlu1 %363  ;;  %v80_v9 = vpop.permute.xlu0 %79 }
  0x78   :  { %v366_v11 = vpop.permute.xlu1 %365  ;;  %v82_v14 = vpop.permute.xlu0 %81 }
  0x79   :  { %v85_v16 = vsel %vm83_vm2, %v82_v14, %v80_v9  ;;  %v84_v18 = vsel %vm83_vm2, %v80_v9, %v82_v14  ;;  %v368_v36 = vsel %vm83_vm2, %v366_v11, %v364_v8  ;;  %v367_v38 = vsel %vm83_vm2, %v364_v8, %v366_v11 }
  0x7a   :  { %v91_v23 = vsel %vm819_vm4, %v85_v16, 0.0  ;;  %v90_v25 = vsel %vm825_vm5, %v84_v18, 0.0  ;;  %v370_v46 = vsel %vm819_vm4, %v368_v36, 0.0  ;;  %v369_v49 = vsel %vm825_vm5, %v367_v38, 0.0 }
  0x7b   :  { %v101_v29 = vrot.slane %v91_v23, 4  ;;  %v100_v33 = vrot.slane %v90_v25, 4  ;;  %v380_v53 = vrot.slane %v370_v46, 4  ;;  %v379_v58 = vrot.slane %v369_v49, 4 }
  0x7c   :  { %v56_v19 = vpop.permute.xlu1 %55  ;;  %v54_v20 = vpop.permute.xlu0 %53 }
  0x7d   :  { %v58_v21 = vsel %vm57_vm3, %v54_v20, %v56_v19  ;;  %v59_v22 = vsel %vm57_vm3, %v56_v19, %v54_v20 }
  0x7e   :  { %v65_v24 = vsel %vm808_vm0, %v59_v22, 0.0  ;;  %v64_v26 = vsel %vm825_vm5, %v58_v21, 0.0 }
  0x7f   :  { %v95_v30 = vrot.slane %v65_v24, 4  ;;  %v94_v34 = vrot.slane %v64_v26, 4 }
  0x80   :  { %v69_v27 = vpop.permute.xlu1 %68  ;;  %v67_v28 = vpop.permute.xlu0 %66 }
  0x81   :  { %v71_v31 = vsel %vm70_vm6, %v67_v28, %v69_v27  ;;  %v72_v32 = vsel %vm70_vm6, %v69_v27, %v67_v28  ;;  %v106_v44 = vsel %vm104_vm7, %v787_v3, %v95_v30  ;;  %v105_v48 = vsel %vm104_vm7, %v777_v1, %v94_v34  ;;  %v14_v1 = vld [vmem:[%s1086_s1 + $0x10] sm:$0xff] }
  0x82   :  { %v78_v35 = vsel %vm46_vm1, %v72_v32, 0.0  ;;  %v107_v41 = vsel %vm104_vm7, %v71_v31, %v100_v33 }
  0x83   :  { %v108_v37 = vsel %vm104_vm7, %v78_v35, %v101_v29 }
  0x84   :  { %v350_v39 = vpop.permute.xlu1 %349  ;;  %v348_v40 = vpop.permute.xlu0 %347  ;;  %150 = vmatprep.subr.mxu0 %v108_v37 }
  0x85   :  { %v351_v42 = vsel %vm57_vm3, %v348_v40, %v350_v39  ;;  %v352_v43 = vsel %vm57_vm3, %v350_v39, %v348_v40  ;;  %151 = vmatpush1.msra.mxu0 %v107_v41 }
  0x86   :  { %v354_v47 = vsel %vm808_vm0, %v352_v43, 0.0  ;;  %152 = vmatprep.subr.mxu0 %v106_v44  ;;  %v353_v50 = vsel %vm825_vm5, %v351_v42, 0.0 }
  0x87   :  { %153 = vmatpush1.msra.mxu0 %v105_v48  ;;  %v374_v54 = vrot.slane %v354_v47, 4  ;;  %v373_v59 = vrot.slane %v353_v50, 4 }
  0x88   :  { %v358_v51 = vpop.permute.xlu1 %357  ;;  %v356_v52 = vpop.permute.xlu0 %355  ;;  %623 = vmatmul.mubr.msk.f32.vlgmr.msra.gmra.mxu0 %vm109_vm8, %v12_v45 }
  0x89   :  { %v359_v55 = vsel %vm70_vm6, %v356_v52, %v358_v51  ;;  %v360_v56 = vsel %vm70_vm6, %v358_v51, %v356_v52  ;;  %192 = vmatprep.mubr.f32.mxu0 %v748_v4  ;;  %v384_v63 = vsel %vm104_vm7, %v783_v2, %v374_v54  ;;  %v383_v3 = vsel %vm104_vm7, %v772_v0, %v373_v59  ;;  %v15_v2 = vld [vmem:[%s1086_s1 + $0x18] sm:$0xff]  ;;  %s751_s1 = smov [#allocation2]  }
  0x8a   :  { %v362_v60 = vsel %vm46_vm1, %v360_v56, 0.0  ;;  %v385_v62 = vsel %vm104_vm7, %v359_v55, %v379_v58  ;;  %s612_s23 = sshll.u32 %s751_s1, 4  ;;  %s613_s23 = int_to_ptr.vmem [resolvable:$true] %s612_s23 }
  0x8b   :  { %v386_v61 = vsel %vm104_vm7, %v362_v60, %v380_v53  ;;  %s725_s24 = scalar_lea.vmem %s613_s23, 2048  ;;  %p730_p1 = scmp.lt.s32.totalorder %s613_s23, %s613_s23 }
  0x8c   :  { %415 = vmatprep.subr.mxu1 %v386_v61  ;;  %624 = vmatmul.mubr.msk.f32.gmra.mxu0 %vm109_vm8, %v13_v57  ;;  %p726_p0 = scmp.ne.s32.totalorder %s613_s23, %s725_s24  ;;  %p731_p2 = scmp.lt.s32.totalorder %s725_s24, %s725_s24 }
  0x8d   :  { %416 = vmatpush1.msra.mxu1 %v385_v62  ;;  %198 = vmatprep.mubr.f32.mxu0 %v748_v4 }
  0x8e   :  { %417 = vmatprep.subr.mxu1 %v384_v63  ;;  %p732_p3 = por %p731_p2, %p730_p1 }
  0x8f   :  { %418 = vmatpush1.msra.mxu1 %v383_v3 }
  0x90   :  { %636 = vmatmul.mubr.msk.f32.vlgmr.msra.gmra.mxu1 %vm109_vm8, %v12_v45  ;;  %625 = vmatmul.mubr.msk.f32.gmra.mxu0 %vm109_vm8, %v14_v1  ;;  %p733_p4 = pnand %p732_p3, %p726_p0 }
  0x91   :  { %457 = vmatprep.mubr.f32.mxu1 %v748_v4  ;;  %204 = vmatprep.mubr.f32.mxu0 %v748_v4 }
  0x94   :  { %637 = vmatmul.mubr.msk.f32.gmra.mxu1 %vm109_vm8, %v13_v57  ;;  %626 = vmatmul.mubr.msk.f32.gmra.mxu0 %vm109_vm8, %v15_v2 }
  0x95   :  { %463 = vmatprep.mubr.f32.mxu1 %v748_v4 }
  0x98   :  { %638 = vmatmul.mubr.msk.f32.gmra.mxu1 %vm109_vm8, %v14_v1 }
  0x99   :  { %469 = vmatprep.mubr.f32.mxu1 %v748_v4 }
  0x9c   :  { %639 = vmatmul.mubr.msk.f32.gmra.mxu1 %vm109_vm8, %v15_v2 }
 0x148   :  { %v910_v0 = vpop.f32.mrf.mxu0 }
 0x149   :  { %v226_v4 = vmul.f32 %v910_v0, %v910_v0 }
 0x14a   :  { %v912_v5 = vpop.f32.mrf.mxu0 }
 0x14b   :  { %v211_v6 = vadd.f32 %v912_v5, %v910_v0  ;;  %v227_v14 = vmul.f32 %v912_v5, %v912_v5 }
 0x14c   :  { %v916_v7 = vpop.f32.mrf.mxu0 }
 0x14d   :  { %212 = vadd.xlane.f32.xlu0 %v211_v6  ;;  %v234_v18 = vadd.f32 %v227_v14, %v226_v4  ;;  %v228_v22 = vmul.f32 %v916_v7, %v916_v7 }
 0x14e   :  { %v922_v10 = vpop.f32.mrf.mxu0 }
 0x14f   :  { %v214_v19 = vadd.f32 %v922_v10, %v916_v7  ;;  %v229_v23 = vmul.f32 %v922_v10, %v922_v10 }
 0x150   :  { %v918_v8 = vpop.f32.mrf.mxu1  ;;  %v936_v16 = vpop.f32.mrf.mxu0 }
 0x151   :  { %v491_v12 = vmul.f32 %v918_v8, %v918_v8  ;;  %v237_v29 = vadd.f32 %v229_v23, %v228_v22  ;;  %v230_v37 = vmul.f32 %v936_v16, %v936_v16 }
 0x152   :  { %v920_v9 = vpop.f32.mrf.mxu1  ;;  %v942_v21 = vpop.f32.mrf.mxu0 }
 0x153   :  { %v476_v11 = vadd.f32 %v920_v9, %v918_v8  ;;  %v492_v13 = vmul.f32 %v920_v9, %v920_v9  ;;  %v217_v32 = vadd.f32 %v942_v21, %v936_v16  ;;  %v231_v38 = vmul.f32 %v942_v21, %v942_v21 }
 0x154   :  { %v934_v15 = vpop.f32.mrf.mxu1  ;;  %v956_v28 = vpop.f32.mrf.mxu0 }
 0x155   :  { %477 = vadd.xlane.f32.xlu0 %v476_v11  ;;  %v499_v17 = vadd.f32 %v492_v13, %v491_v12  ;;  %v493_v26 = vmul.f32 %v934_v15, %v934_v15  ;;  %v240_v40 = vadd.f32 %v231_v38, %v230_v37  ;;  %v232_v45 = vmul.f32 %v956_v28, %v956_v28 }
 0x156   :  { %v940_v20 = vpop.f32.mrf.mxu1  ;;  %v962_v33 = vpop.f32.mrf.mxu0 }
 0x157   :  { %500 = vadd.xlane.f32.xlu1 %v499_v17  ;;  %v479_v25 = vadd.f32 %v940_v20, %v934_v15  ;;  %v494_v27 = vmul.f32 %v940_v20, %v940_v20  ;;  %v220_v36 = vadd.f32 %v962_v33, %v956_v28  ;;  %v233_v44 = vmul.f32 %v962_v33, %v962_v33 }
 0x158   :  { %v948_v24 = vpop.f32.mrf.mxu1 }
 0x159   :  { %235 = vadd.xlane.f32.xlu0 %v234_v18  ;;  %v502_v31 = vadd.f32 %v494_v27, %v493_v26  ;;  %v495_v42 = vmul.f32 %v948_v24, %v948_v24  ;;  %v243_v49 = vadd.f32 %v233_v44, %v232_v45 }
 0x15a   :  { %v958_v30 = vpop.f32.mrf.mxu1 }
 0x15b   :  { %215 = vadd.xlane.f32.xlu1 %v214_v19  ;;  %v482_v35 = vadd.f32 %v958_v30, %v948_v24  ;;  %v496_v43 = vmul.f32 %v958_v30, %v958_v30 }
 0x15c   :  { %v964_v34 = vpop.f32.mrf.mxu1 }
 0x15d   :  { %480 = vadd.xlane.f32.xlu0 %v479_v25  ;;  %v505_v47 = vadd.f32 %v496_v43, %v495_v42  ;;  %v497_v48 = vmul.f32 %v964_v34, %v964_v34 }
 0x15e   :  { %v974_v39 = vpop.f32.mrf.mxu1 }
 0x15f   :  { %238 = vadd.xlane.f32.xlu1 %v237_v29  ;;  %v485_v41 = vadd.f32 %v974_v39, %v964_v34  ;;  %v498_v46 = vmul.f32 %v974_v39, %v974_v39 }
 0x161   :  { %503 = vadd.xlane.f32.xlu0 %v502_v31  ;;  %v508_v50 = vadd.f32 %v498_v46, %v497_v48 }
 0x163   :  { %218 = vadd.xlane.f32.xlu1 %v217_v32 }
 0x165   :  { %483 = vadd.xlane.f32.xlu0 %v482_v35 }
 0x167   :  { %221 = vadd.xlane.f32.xlu1 %v220_v36 }
 0x169   :  { %241 = vadd.xlane.f32.xlu0 %v240_v40 }
 0x16b   :  { %486 = vadd.xlane.f32.xlu1 %v485_v41 }
 0x16d   :  { %506 = vadd.xlane.f32.xlu0 %v505_v47 }
 0x16f   :  { %244 = vadd.xlane.f32.xlu1 %v243_v49 }
 0x171   :  { %509 = vadd.xlane.f32.xlu0 %v508_v50 }
 0x1d6   :  { %v213_v51 = vpop.xlane.xlu0 %212 }
 0x1de   :  { %v478_v52 = vpop.xlane.xlu0 %477 }
 0x1e0   :  { %v501_v53 = vpop.xlane.xlu1 %500 }
 0x1e2   :  { %v236_v54 = vpop.xlane.xlu0 %235 }
 0x1e4   :  { %v216_v55 = vpop.xlane.xlu1 %215 }
 0x1e5   :  { %v223_v62 = vadd.f32 %v216_v55, %v213_v51 }
 0x1e6   :  { %v481_v56 = vpop.xlane.xlu0 %480 }
 0x1e7   :  { %v488_v1 = vadd.f32 %v481_v56, %v478_v52 }
 0x1e8   :  { %v239_v57 = vpop.xlane.xlu1 %238 }
 0x1e9   :  { %v246_v6 = vadd.f32 %v239_v57, %v236_v54 }
 0x1ea   :  { %v504_v58 = vpop.xlane.xlu0 %503 }
 0x1eb   :  { %v511_v18 = vadd.f32 %v504_v58, %v501_v53 }
 0x1ec   :  { %v219_v59 = vpop.xlane.xlu1 %218 }
 0x1ed   :  { %v224_v3 = vadd.f32 %v223_v62, %v219_v59 }
 0x1ee   :  { %v484_v60 = vpop.xlane.xlu0 %483 }
 0x1ef   :  { %v489_v4 = vadd.f32 %v488_v1, %v484_v60 }
 0x1f0   :  { %v222_v61 = vpop.xlane.xlu1 %221 }
 0x1f1   :  { %v225_v11 = vadd.f32 %v224_v3, %v222_v61 }
 0x1f2   :  { %v242_v63 = vpop.xlane.xlu0 %241 }
 0x1f3   :  { %v247_v13 = vadd.f32 %v246_v6, %v242_v63  ;;  %v250_v19 = vmul.f32 0.0009765625, %v225_v11 }
 0x1f4   :  { %v487_v2 = vpop.xlane.xlu1 %486 }
 0x1f5   :  { %v490_v14 = vadd.f32 %v489_v4, %v487_v2  ;;  %v252_v27 = vmul.f32 %v250_v19, %v250_v19  ;;  %v262_v52 = vsub.f32 %v910_v0, %v250_v19  ;;  %v263_v53 = vsub.f32 %v912_v5, %v250_v19 }
 0x1f6   :  { %v507_v12 = vpop.xlane.xlu0 %506  ;;  %v264_v54 = vsub.f32 %v916_v7, %v250_v19  ;;  %v265_v55 = vsub.f32 %v922_v10, %v250_v19  ;;  %v266_v58 = vsub.f32 %v936_v16, %v250_v19  ;;  %v267_v59 = vsub.f32 %v942_v21, %v250_v19 }
 0x1f7   :  { %v990_v25 = vmul.f32 0.0009765625, %v490_v14  ;;  %v512_v26 = vadd.f32 %v511_v18, %v507_v12  ;;  %v268_v60 = vsub.f32 %v956_v28, %v250_v19  ;;  %v269_v61 = vsub.f32 %v962_v33, %v250_v19 }
 0x1f8   :  { %v245_v17 = vpop.xlane.xlu1 %244 }
 0x1f9   :  { %v248_v22 = vadd.f32 %v247_v13, %v245_v17  ;;  %v516_v36 = vmul.f32 %v990_v25, %v990_v25  ;;  %v526_v7 = vsub.f32 %v918_v8, %v990_v25  ;;  %v527_v2 = vsub.f32 %v920_v9, %v990_v25 }
 0x1fa   :  { %v510_v23 = vpop.xlane.xlu0 %509  ;;  %v528_v4 = vsub.f32 %v934_v15, %v990_v25  ;;  %v529_v13 = vsub.f32 %v940_v20, %v990_v25  ;;  %v530_v9 = vsub.f32 %v948_v24, %v990_v25  ;;  %v531_v19 = vsub.f32 %v958_v30, %v990_v25 }
 0x1fb   :  { %v251_v29 = vmul.f32 0.0009765625, %v248_v22  ;;  %v513_v31 = vadd.f32 %v512_v26, %v510_v23  ;;  %v532_v23 = vsub.f32 %v964_v34, %v990_v25 }
 0x1fd   :  { %v253_v32 = vsub.f32 %v251_v29, %v252_v27  ;;  %v515_v35 = vmul.f32 0.0009765625, %v513_v31  ;;  %v533_v27 = vsub.f32 %v974_v39, %v990_v25 }
 0x1ff   :  { %v254_v37 = vmax.f32 %v253_v32, 0.0  ;;  %v517_v38 = vsub.f32 %v515_v35, %v516_v36 }
 0x201   :  { %v255_v40 = vadd.f32 1e-05, %v254_v37  ;;  %v518_v41 = vmax.f32 %v517_v38, 0.0 }
 0x203   :  { %657 = vrsqrt.f32 %v255_v40  ;;  %v519_v42 = vadd.f32 1e-05, %v518_v41  ;;  %v257_v43 = vmul.f32 0.5, %v255_v40 }
 0x205   :  { %659 = vrsqrt.f32 %v519_v42  ;;  %v521_v46 = vmul.f32 0.5, %v519_v42 }
 0x210   :  { %v658_v44 = vpop.eup %657 }
 0x211   :  { %v258_v45 = vmul.f32 %v658_v44, %v257_v43 }
 0x212   :  { %v660_v47 = vpop.eup %659 }
 0x213   :  { %v259_v48 = vmul.f32 %v658_v44, %v258_v45  ;;  %v522_v49 = vmul.f32 %v660_v47, %v521_v46 }
 0x215   :  { %v260_v50 = vsub.f32 1.5, %v259_v48  ;;  %v523_v51 = vmul.f32 %v660_v47, %v522_v49 }
 0x217   :  { %v261_v56 = vmul.f32 %v658_v44, %v260_v50  ;;  %v524_v57 = vsub.f32 1.5, %v523_v51 }
 0x219   :  { %v1002_v62 = vmul.f32 %v262_v52, %v261_v56  ;;  %v1004_v63 = vmul.f32 %v263_v53, %v261_v56  ;;  %v1006_v0 = vmul.f32 %v264_v54, %v261_v56  ;;  %v1008_v5 = vmul.f32 %v265_v55, %v261_v56 }
 0x21a   :  { %v1012_v10 = vmul.f32 %v266_v58, %v261_v56  ;;  %v1014_v16 = vmul.f32 %v267_v59, %v261_v56  ;;  %v1016_v21 = vmul.f32 %v268_v60, %v261_v56  ;;  %v525_v3 = vmul.f32 %v660_v47, %v524_v57 }
 0x21b   :  { %v627_v28 = vmul.f32 -1.442695, %v1002_v62  ;;  %v628_v33 = vmul.f32 -1.442695, %v1004_v63  ;;  %v629_v1 = vmul.f32 -1.442695, %v1006_v0  ;;  %v1023_v6 = vmul.f32 %v269_v61, %v261_v56 }
 0x21c   :  { %v630_v8 = vmul.f32 -1.442695, %v1008_v5  ;;  %v631_v11 = vmul.f32 -1.442695, %v1012_v10  ;;  %v1029_v12 = vmul.f32 %v526_v7, %v525_v3  ;;  %v632_v14 = vmul.f32 -1.442695, %v1014_v16 }
 0x21d   :  { %661 = vpow2.f32 %v627_v28  ;;  %v1034_v17 = vmul.f32 %v527_v2, %v525_v3  ;;  %v633_v18 = vmul.f32 -1.442695, %v1016_v21  ;;  %v1039_v15 = vmul.f32 %v528_v4, %v525_v3 }
 0x21e   :  { %663 = vpow2.f32 %v628_v33  ;;  %v634_v22 = vmul.f32 -1.442695, %v1023_v6  ;;  %v1044_v20 = vmul.f32 %v529_v13, %v525_v3  ;;  %v1048_v26 = vmul.f32 %v530_v9, %v525_v3 }
 0x21f   :  { %665 = vpow2.f32 %v629_v1  ;;  %v640_v24 = vmul.f32 -1.442695, %v1029_v12  ;;  %v1053_v29 = vmul.f32 %v531_v19, %v525_v3  ;;  %v641_v30 = vmul.f32 -1.442695, %v1034_v17 }
 0x220   :  { %667 = vpow2.f32 %v630_v8  ;;  %v1056_v31 = vmul.f32 %v532_v23, %v525_v3  ;;  %v642_v32 = vmul.f32 -1.442695, %v1039_v15  ;;  %v1059_v34 = vmul.f32 %v533_v27, %v525_v3 }
 0x221   :  { %669 = vpow2.f32 %v631_v11  ;;  %v643_v35 = vmul.f32 -1.442695, %v1044_v20  ;;  %v644_v36 = vmul.f32 -1.442695, %v1048_v26  ;;  %v645_v39 = vmul.f32 -1.442695, %v1053_v29 }
 0x222   :  { %671 = vpow2.f32 %v632_v14  ;;  %v646_v25 = vmul.f32 -1.442695, %v1056_v31  ;;  %v647_v37 = vmul.f32 -1.442695, %v1059_v34 }
 0x223   :  { %673 = vpow2.f32 %v633_v18 }
 0x224   :  { %675 = vpow2.f32 %v634_v22 }
 0x225   :  { %677 = vpow2.f32 %v640_v24 }
 0x226   :  { %679 = vpow2.f32 %v641_v30 }
 0x227   :  { %681 = vpow2.f32 %v642_v32 }
 0x228   :  { %683 = vpow2.f32 %v643_v35 }
 0x229   :  { %685 = vpow2.f32 %v644_v36 }
 0x22a   :  { %v662_v38 = vpop.eup %661  ;;  %687 = vpow2.f32 %v645_v39 }
 0x22b   :  { %v664_v40 = vpop.eup %663  ;;  %v302_v41 = vadd.f32 1.0, %v662_v38  ;;  %689 = vpow2.f32 %v646_v25 }
 0x22c   :  { %v666_v42 = vpop.eup %665  ;;  %v303_v43 = vadd.f32 1.0, %v664_v40  ;;  %691 = vpow2.f32 %v647_v37 }
 0x22d   :  { %v668_v44 = vpop.eup %667  ;;  %v304_v45 = vadd.f32 1.0, %v666_v42  ;;  %693 = vrcp.f32 %v302_v41 }
 0x22e   :  { %v670_v46 = vpop.eup %669  ;;  %v305_v47 = vadd.f32 1.0, %v668_v44  ;;  %695 = vrcp.f32 %v303_v43 }
 0x22f   :  { %v672_v48 = vpop.eup %671  ;;  %v306_v49 = vadd.f32 1.0, %v670_v46  ;;  %697 = vrcp.f32 %v304_v45 }
 0x230   :  { %v674_v50 = vpop.eup %673  ;;  %v307_v51 = vadd.f32 1.0, %v672_v48  ;;  %699 = vrcp.f32 %v305_v47 }
 0x231   :  { %v676_v52 = vpop.eup %675  ;;  %v308_v53 = vadd.f32 1.0, %v674_v50  ;;  %701 = vrcp.f32 %v306_v49 }
 0x232   :  { %v678_v54 = vpop.eup %677  ;;  %v309_v55 = vadd.f32 1.0, %v676_v52  ;;  %703 = vrcp.f32 %v307_v51 }
 0x233   :  { %v680_v56 = vpop.eup %679  ;;  %705 = vrcp.f32 %v308_v53  ;;  %v566_v57 = vadd.f32 1.0, %v678_v54 }
 0x234   :  { %v682_v58 = vpop.eup %681  ;;  %707 = vrcp.f32 %v309_v55  ;;  %v567_v59 = vadd.f32 1.0, %v680_v56 }
 0x235   :  { %v684_v60 = vpop.eup %683  ;;  %v568_v61 = vadd.f32 1.0, %v682_v58  ;;  %709 = vrcp.f32 %v566_v57 }
 0x236   :  { %v686_v7 = vpop.eup %685  ;;  %v569_v28 = vadd.f32 1.0, %v684_v60  ;;  %711 = vrcp.f32 %v567_v59 }
 0x237   :  { %v688_v33 = vpop.eup %687  ;;  %v570_v1 = vadd.f32 1.0, %v686_v7  ;;  %713 = vrcp.f32 %v568_v61 }
 0x238   :  { %v690_v3 = vpop.eup %689  ;;  %v571_v2 = vadd.f32 1.0, %v688_v33  ;;  %715 = vrcp.f32 %v569_v28 }
 0x239   :  { %v692_v8 = vpop.eup %691  ;;  %v572_v4 = vadd.f32 1.0, %v690_v3  ;;  %717 = vrcp.f32 %v570_v1 }
 0x23a   :  { %v694_v11 = vpop.eup %693  ;;  %v573_v13 = vadd.f32 1.0, %v692_v8  ;;  %719 = vrcp.f32 %v571_v2 }
 0x23b   :  { %v696_v14 = vpop.eup %695  ;;  %v326_v9 = vmul.f32 %v694_v11, %v1002_v62  ;;  %721 = vrcp.f32 %v572_v4 }
 0x23c   :  { %v698_v18 = vpop.eup %697  ;;  %v327_v19 = vmul.f32 %v696_v14, %v1004_v63  ;;  %723 = vrcp.f32 %v573_v13 }
 0x23d   :  { %v700_v22 = vpop.eup %699  ;;  %v328_v23 = vmul.f32 %v698_v18, %v1006_v0  ;;  %334 = vst [vmem:[#allocation2] sm:$0xff] %v326_v9 }
 0x23e   :  { %v702_v24 = vpop.eup %701  ;;  %v329_v27 = vmul.f32 %v700_v22, %v1008_v5  ;;  %335 = vst [vmem:[#allocation2 + $0x8] sm:$0xff] %v327_v19 }
 0x23f   :  { %v704_v30 = vpop.eup %703  ;;  %v330_v32 = vmul.f32 %v702_v24, %v1012_v10  ;;  %336 = vst [vmem:[#allocation2 + $0x10] sm:$0xff] %v328_v23 }
 0x240   :  { %v706_v35 = vpop.eup %705  ;;  %v331_v62 = vmul.f32 %v704_v30, %v1014_v16  ;;  %337 = vst [vmem:[#allocation2 + $0x18] sm:$0xff] %v329_v27 }
 0x241   :  { %v708_v36 = vpop.eup %707  ;;  %v332_v63 = vmul.f32 %v706_v35, %v1016_v21  ;;  %338 = vst [vmem:[#allocation2 + $0x20] sm:$0xff] %v330_v32 }
 0x242   :  { %v710_v39 = vpop.eup %709  ;;  %v333_v0 = vmul.f32 %v708_v36, %v1023_v6  ;;  %339 = vst [vmem:[#allocation2 + $0x28] sm:$0xff] %v331_v62 }
 0x243   :  { %v712_v25 = vpop.eup %711  ;;  %340 = vst [vmem:[#allocation2 + $0x30] sm:$0xff] %v332_v63  ;;  %v590_v5 = vmul.f32 %v710_v39, %v1029_v12 }
 0x244   :  { %v714_v37 = vpop.eup %713  ;;  %341 = vst [vmem:[#allocation2 + $0x38] sm:$0xff] %v333_v0  ;;  %v591_v10 = vmul.f32 %v712_v25, %v1034_v17 }
 0x245   :  { %v716_v38 = vpop.eup %715  ;;  %v592_v16 = vmul.f32 %v714_v37, %v1039_v15  ;;  %599 = vst [vmem:[#allocation2 + $0x40] sm:$0xff] %v590_v5 }
 0x246   :  { %v718_v40 = vpop.eup %717  ;;  %v593_v21 = vmul.f32 %v716_v38, %v1044_v20  ;;  %600 = vst [vmem:[#allocation2 + $0x48] sm:$0xff] %v591_v10 }
 0x247   :  { %v720_v6 = vpop.eup %719  ;;  %v594_v41 = vmul.f32 %v718_v40, %v1048_v26  ;;  %601 = vst [vmem:[#allocation2 + $0x50] sm:$0xff] %v592_v16 }
 0x248   :  { %v722_v42 = vpop.eup %721  ;;  %v595_v12 = vmul.f32 %v720_v6, %v1053_v29  ;;  %602 = vst [vmem:[#allocation2 + $0x58] sm:$0xff] %v593_v21 }
 0x249   :  { %v724_v43 = vpop.eup %723  ;;  %v596_v17 = vmul.f32 %v722_v42, %v1056_v31  ;;  %603 = vst [vmem:[#allocation2 + $0x60] sm:$0xff] %v594_v41 }
 0x24a   :  { %v597_v15 = vmul.f32 %v724_v43, %v1059_v34  ;;  %604 = vst [vmem:[#allocation2 + $0x68] sm:$0xff] %v595_v12 }
 0x24b   :  { %605 = vst [vmem:[#allocation2 + $0x70] sm:$0xff] %v596_v17 }
 0x24c   :  { %606 = vst [vmem:[#allocation2 + $0x78] sm:$0xff] %v597_v15 }
 0x24d   :  { %736 = shalt.err (!%p733_p4)
}
 0x24e   :  { %s752_s25 = smov 256   ;;  %s753_s26 = smov 16  }
 0x24f   :  { %618 = dma.vmem_to_hbm [thread:$0]  %s613_s23, 2048, %s1087_s2, [#allocation3], %s752_s25, %s752_s25, %s753_s26  }
 0x250   :  { %745 = dma.done.wait [#allocation3], 2048  }
 0x251   :  { %746 = vsyncadd [#allocation3], 4294965248 }
 0x252   :  { %622 = vsyncpa [#allocation3], 1 }

</bundles_post_ra>
